<compile_context>
chip_gen: v6e
topology: v6e:2x2x1
jax: 0.10.0
libtpu: 0.0.40
codegen_flags: <defaults>
</compile_context>

<pallas_src>
import jax
import jax.numpy as jnp
from jax.experimental import pallas as pl
from jax.experimental.pallas import tpu as pltpu


def _round_up(x, m):
    return ((x + m - 1) // m) * m


def _cdiv(a, b):
    return (a + b - 1) // b


def _choose_batch_tiling(B, block_b=256):
    """Pick (TB, Bp): multiple-of-16 tiles (bf16 sublane packing), an even
    number of grid steps (>=2) when B allows so v7x megacore gets balanced
    work, and minimal batch padding."""
    if B <= 16:
        tb = _round_up(max(B, 8), 8)
        return tb, tb
    n = max(2, _cdiv(B, block_b))
    if n % 2:
        n += 1
    tb = _round_up(_cdiv(B, n), 16)
    return tb, tb * n


def _pick_vmem_limit_bytes():
    # v5e/v6e have 128 MiB physical VMEM (raise the 16/32 MiB scoped default);
    # v7x has only 64 MiB, so cap at ~3/4 of the actual capacity.
    try:
        cap = pltpu.get_tpu_info().vmem_capacity_bytes
        return int(min((cap * 3) // 4, 96 * 1024 * 1024))
    except Exception:
        return 32 * 1024 * 1024  # safe on every generation


def decoder_kernel(z_ref, w1_ref, b1_ref, w2_ref, b2_ref, out_ref):
    # fc1: bf16 operands on the MXU, f32 accumulate; bias + ReLU in f32 (VPU).
    h = jnp.dot(z_ref[...], w1_ref[...], preferred_element_type=jnp.float32)
    h = jnp.maximum(h + b1_ref[...], 0.0)                # (TB, H) + (1, H)
    # fc2: cast the intermediate back to bf16 for the MXU, accumulate in f32.
    o = jnp.dot(h.astype(w2_ref.dtype), w2_ref[...],
                preferred_element_type=jnp.float32)
    out_ref[...] = jax.nn.sigmoid(o + b2_ref[...]).astype(out_ref.dtype)  # EUP


def prepare_decoder_params(w1, b1, w2, b2):
    """One-time parameter prep (hoisted out of the forward hot path):
    weights -> bf16 [in, out], biases -> f32 [1, out]."""
    w1_p = w1.astype(jnp.bfloat16)
    w2_p = w2.astype(jnp.bfloat16)
    b1_p = b1.reshape(1, -1).astype(jnp.float32)
    b2_p = b2.reshape(1, -1).astype(jnp.float32)
    return w1_p, b1_p, w2_p, b2_p


def decoder_forward(z, prepared_params, *, block_b=256):
    """z: [B, L] f32; prepared_params from prepare_decoder_params -> [B, O]."""
    w1_p, b1_p, w2_p, b2_p = prepared_params
    B, L = z.shape
    H = w1_p.shape[1]
    O = w2_p.shape[1]

    TB, Bp = _choose_batch_tiling(B, block_b)

    # Per-call work on the activation only: bf16 cast first, then pad just the
    # batch axis (no f32 intermediates, no lane-padding of L).
    z_p = z.astype(jnp.bfloat16)
    if Bp != B:
        z_p = jnp.pad(z_p, ((0, Bp - B), (0, 0)))

    grid = (Bp // TB,)

    cost = pl.CostEstimate(
        flops=2 * Bp * (L * H + H * O),
        transcendentals=Bp * O,                              # sigmoid exp
        bytes_accessed=(z_p.size * 2 + w1_p.size * 2 + w2_p.size * 2
                        + b1_p.size * 4 + b2_p.size * 4 + Bp * O * 4),
    )

    def make_call(single_buffer_weights):
        # Weights/biases keep a constant block index -> DMA'd once and kept
        # VMEM-resident.  Single-buffering them halves their VMEM footprint
        # (matters on v7x's 64 MiB); z/out tiles stay double-buffered.
        wkw = ({"pipeline_mode": pl.Buffered(1)}
               if single_buffer_weights else {})
        grid_spec = pl.GridSpec(
            grid=grid,
            in_specs=[
                # Activation tile marches over the batch axis (pipelined).
                pl.BlockSpec((TB, L), lambda i: (i, 0)),
                pl.BlockSpec((L, H), lambda i: (0, 0), **wkw),
                pl.BlockSpec((1, H), lambda i: (0, 0), **wkw),
                pl.BlockSpec((H, O), lambda i: (0, 0), **wkw),
                pl.BlockSpec((1, O), lambda i: (0, 0), **wkw),
            ],
            out_specs=pl.BlockSpec((TB, O), lambda i: (i, 0)),
        )
        return pl.pallas_call(
            decoder_kernel,
            out_shape=jax.ShapeDtypeStruct((Bp, O), jnp.float32),
            grid_spec=grid_spec,
            compiler_params=pltpu.CompilerParams(
                # Batch tiles are independent; grid is sized with an even
                # number of steps so both v7x TensorCores get work.
                dimension_semantics=("parallel",),
                vmem_limit_bytes=_pick_vmem_limit_bytes(),
            ),
            cost_estimate=cost,
        )(z_p, w1_p, b1_p, w2_p, b2_p)

    # NOTE: for very large hidden dims, full W1/W2 residency can exceed v7x's
    # 64 MiB VMEM; that regime would need a K-grid axis + f32 accumulator.
    try:
        out_p = make_call(True)
    except Exception:
        out_p = make_call(False)   # older JAX without pipeline_mode support

    return out_p[:B]


def init_decoder_params(key, latent_dim, hidden_dim, output_dim):
    """Deterministic synthetic parameters (PyTorch Linear-like uniform init).
    Stored as [in, out] (transposed vs. torch's [out, in]) so the kernel
    computes z @ W directly."""
    k1, k2, k3, k4 = jax.random.split(key, 4)
    bound1 = 1.0 / jnp.sqrt(latent_dim)
    bound2 = 1.0 / jnp.sqrt(hidden_dim)
    w1 = jax.random.uniform(k1, (latent_dim, hidden_dim), jnp.float32,
                            -bound1, bound1)
    b1 = jax.random.uniform(k2, (1, hidden_dim), jnp.float32, -bound1, bound1)
    w2 = jax.random.uniform(k3, (hidden_dim, output_dim), jnp.float32,
                            -bound2, bound2)
    b2 = jax.random.uniform(k4, (1, output_dim), jnp.float32, -bound2, bound2)
    return w1, b1, w2, b2


if __name__ == "__main__":
    # Small shapes implied by the module: z is [batch, latent_dim].
    batch, latent_dim, hidden_dim, output_dim = 32, 16, 32, 64

    key = jax.random.PRNGKey(0)
    kz, kp = jax.random.split(key)
    z = jax.random.normal(kz, (batch, latent_dim), dtype=jnp.float32)
    w1, b1, w2, b2 = init_decoder_params(kp, latent_dim, hidden_dim, output_dim)

    # One-time parameter prep (bf16 cast) hoisted out of the forward path.
    prepared = prepare_decoder_params(w1, b1, w2, b2)

    out = decoder_forward(z, prepared)
    jax.block_until_ready(out)

    # Pure-JAX f32 reference of the same math.  Matmul inputs are bf16 in the
    # kernel, so use a bf16-appropriate tolerance (output is sigmoid-bounded).
    ref = jax.nn.sigmoid(jnp.maximum(z @ w1 + b1, 0.0) @ w2 + b2)
    assert out.shape == (batch, output_dim)
    assert jnp.allclose(out, ref, atol=2e-2, rtol=2e-2), (
        float(jnp.max(jnp.abs(out - ref))))

    print("KERNEL_OK")
</pallas_src>

<mosaic_0001>
module attributes {stable_mosaic.version = 11 : i64} {
  func.func @decoder_kernel(%arg0: i32, %arg1: memref<16x16xbf16, #tpu.memory_space<vmem>>, %arg2: memref<16x32xbf16, #tpu.memory_space<vmem>>, %arg3: memref<1x32xf32, #tpu.memory_space<vmem>>, %arg4: memref<32x64xbf16, #tpu.memory_space<vmem>>, %arg5: memref<1x64xf32, #tpu.memory_space<vmem>>, %arg6: memref<16x64xf32, #tpu.memory_space<vmem>>) attributes {dimension_semantics = [#tpu.dimension_semantics<parallel>], iteration_bounds = array<i64: 2>, scalar_prefetch = 0 : i64, scratch_operands = 0 : i64, tpu.core_type = #tpu.core_type<tc>, window_params = [{transform_indices = @transform_0, window_bounds = array<i64: 16, 16>}, {pipeline_mode = #tpu.pipeline_mode<synchronous>, transform_indices = @transform_1, window_bounds = array<i64: 16, 32>}, {pipeline_mode = #tpu.pipeline_mode<synchronous>, transform_indices = @transform_2, window_bounds = array<i64: 1, 32>}, {pipeline_mode = #tpu.pipeline_mode<synchronous>, transform_indices = @transform_3, window_bounds = array<i64: 32, 64>}, {pipeline_mode = #tpu.pipeline_mode<synchronous>, transform_indices = @transform_4, window_bounds = array<i64: 1, 64>}, {transform_indices = @transform_5, window_bounds = array<i64: 16, 64>}]} {
    %c0 = arith.constant 0 : index
    %c0_0 = arith.constant 0 : index
    %0 = vector.load %arg1[%c0, %c0_0] : memref<16x16xbf16, #tpu.memory_space<vmem>>, vector<16x16xbf16>
    %c0_1 = arith.constant 0 : index
    %c0_2 = arith.constant 0 : index
    %1 = vector.load %arg2[%c0_1, %c0_2] : memref<16x32xbf16, #tpu.memory_space<vmem>>, vector<16x32xbf16>
    %cst = arith.constant dense<0.000000e+00> : vector<16x32xf32>
    %2 = tpu.matmul %0, %1, %cst {dimension_numbers = #tpu.dot_dimension_numbers<[1], [0], [0], [1], [0, 0, 1, 1], [], []>} : vector<16x16xbf16>, vector<16x32xbf16>, vector<16x32xf32> -> vector<16x32xf32>
    %c0_3 = arith.constant 0 : index
    %c0_4 = arith.constant 0 : index
    %3 = vector.load %arg3[%c0_3, %c0_4] : memref<1x32xf32, #tpu.memory_space<vmem>>, vector<1x32xf32>
    %4 = vector.broadcast %3 : vector<1x32xf32> to vector<16x32xf32>
    %5 = arith.addf %2, %4 : vector<16x32xf32>
    %cst_5 = arith.constant 0.000000e+00 : f32
    %6 = vector.broadcast %cst_5 : f32 to vector<16x32xf32>
    %7 = arith.maximumf %5, %6 : vector<16x32xf32>
    %8 = arith.truncf %7 : vector<16x32xf32> to vector<16x32xbf16>
    %c0_6 = arith.constant 0 : index
    %c0_7 = arith.constant 0 : index
    %9 = vector.load %arg4[%c0_6, %c0_7] : memref<32x64xbf16, #tpu.memory_space<vmem>>, vector<32x64xbf16>
    %cst_8 = arith.constant dense<0.000000e+00> : vector<16x64xf32>
    %10 = tpu.matmul %8, %9, %cst_8 {dimension_numbers = #tpu.dot_dimension_numbers<[1], [0], [0], [1], [0, 0, 1, 1], [], []>} : vector<16x32xbf16>, vector<32x64xbf16>, vector<16x64xf32> -> vector<16x64xf32>
    %c0_9 = arith.constant 0 : index
    %c0_10 = arith.constant 0 : index
    %11 = vector.load %arg5[%c0_9, %c0_10] : memref<1x64xf32, #tpu.memory_space<vmem>>, vector<1x64xf32>
    %12 = vector.broadcast %11 : vector<1x64xf32> to vector<16x64xf32>
    %13 = arith.addf %10, %12 : vector<16x64xf32>
    %14 = arith.negf %13 : vector<16x64xf32>
    %15 = math.exp %14 : vector<16x64xf32>
    %cst_11 = arith.constant 1.000000e+00 : f32
    %16 = vector.broadcast %cst_11 : f32 to vector<16x64xf32>
    %17 = arith.addf %16, %15 : vector<16x64xf32>
    %18 = arith.divf %16, %17 : vector<16x64xf32>
    %c0_12 = arith.constant 0 : index
    %c0_13 = arith.constant 0 : index
    %19 = vector.load %arg6[%c0_12, %c0_13] : memref<16x64xf32, #tpu.memory_space<vmem>>, vector<16x64xf32>
    tpu.vector_store %arg6[%c0_12, %c0_13], %18 {strides = array<i32>} : memref<16x64xf32, #tpu.memory_space<vmem>>, vector<16x64xf32>,
    return
  }
  func.func @transform_0(%arg0: i32) -> (i32, i32) {
    %c0_i32 = arith.constant 0 : i32
    %c0_i32_0 = arith.constant 0 : i32
    return %arg0, %c0_i32 : i32, i32
  }
  func.func @transform_1(%arg0: i32) -> (i32, i32) {
    %c0_i32 = arith.constant 0 : i32
    %c0_i32_0 = arith.constant 0 : i32
    %c0_i32_1 = arith.constant 0 : i32
    return %c0_i32, %c0_i32_0 : i32, i32
  }
  func.func @transform_2(%arg0: i32) -> (i32, i32) {
    %c0_i32 = arith.constant 0 : i32
    %c0_i32_0 = arith.constant 0 : i32
    %c0_i32_1 = arith.constant 0 : i32
    return %c0_i32, %c0_i32_0 : i32, i32
  }
  func.func @transform_3(%arg0: i32) -> (i32, i32) {
    %c0_i32 = arith.constant 0 : i32
    %c0_i32_0 = arith.constant 0 : i32
    %c0_i32_1 = arith.constant 0 : i32
    return %c0_i32, %c0_i32_0 : i32, i32
  }
  func.func @transform_4(%arg0: i32) -> (i32, i32) {
    %c0_i32 = arith.constant 0 : i32
    %c0_i32_0 = arith.constant 0 : i32
    %c0_i32_1 = arith.constant 0 : i32
    return %c0_i32, %c0_i32_0 : i32, i32
  }
  func.func @transform_5(%arg0: i32) -> (i32, i32) {
    %c0_i32 = arith.constant 0 : i32
    %c0_i32_0 = arith.constant 0 : i32
    return %arg0, %c0_i32 : i32, i32
  }
}

module attributes {stable_mosaic.version = 11 : i64} {
  func.func @decoder_kernel(%arg0: i32, %arg1: memref<16x16xbf16, #tpu.memory_space<vmem>>, %arg2: memref<16x32xbf16, #tpu.memory_space<vmem>>, %arg3: memref<1x32xf32, #tpu.memory_space<vmem>>, %arg4: memref<32x64xbf16, #tpu.memory_space<vmem>>, %arg5: memref<1x64xf32, #tpu.memory_space<vmem>>, %arg6: memref<16x64xf32, #tpu.memory_space<vmem>>) attributes {dimension_semantics = [#tpu.dimension_semantics<parallel>], iteration_bounds = array<i64: 2>, scalar_prefetch = 0 : i64, scratch_operands = 0 : i64, tpu.core_type = #tpu.core_type<tc>, window_params = [{transform_indices = @transform_0, window_bounds = array<i64: 16, 16>}, {pipeline_mode = #tpu.pipeline_mode<synchronous>, transform_indices = @transform_1, window_bounds = array<i64: 16, 32>}, {pipeline_mode = #tpu.pipeline_mode<synchronous>, transform_indices = @transform_2, window_bounds = array<i64: 1, 32>}, {pipeline_mode = #tpu.pipeline_mode<synchronous>, transform_indices = @transform_3, window_bounds = array<i64: 32, 64>}, {pipeline_mode = #tpu.pipeline_mode<synchronous>, transform_indices = @transform_4, window_bounds = array<i64: 1, 64>}, {transform_indices = @transform_5, window_bounds = array<i64: 16, 64>}]} {
    %c0 = arith.constant 0 : index
    %c0_0 = arith.constant 0 : index
    %0 = vector.load %arg1[%c0, %c0_0] : memref<16x16xbf16, #tpu.memory_space<vmem>>, vector<16x16xbf16>
    %c0_1 = arith.constant 0 : index
    %c0_2 = arith.constant 0 : index
    %1 = vector.load %arg2[%c0_1, %c0_2] : memref<16x32xbf16, #tpu.memory_space<vmem>>, vector<16x32xbf16>
    %cst = arith.constant dense<0.000000e+00> : vector<16x32xf32>
    %2 = tpu.matmul %0, %1, %cst {dimension_numbers = #tpu.dot_dimension_numbers<[1], [0], [0], [1], [0, 0, 1, 1], [], []>} : vector<16x16xbf16>, vector<16x32xbf16>, vector<16x32xf32> -> vector<16x32xf32>
    %c0_3 = arith.constant 0 : index
    %c0_4 = arith.constant 0 : index
    %3 = vector.load %arg3[%c0_3, %c0_4] : memref<1x32xf32, #tpu.memory_space<vmem>>, vector<1x32xf32>
    %4 = vector.broadcast %3 : vector<1x32xf32> to vector<16x32xf32>
    %5 = arith.addf %2, %4 : vector<16x32xf32>
    %cst_5 = arith.constant 0.000000e+00 : f32
    %6 = vector.broadcast %cst_5 : f32 to vector<16x32xf32>
    %7 = arith.maximumf %5, %6 : vector<16x32xf32>
    %8 = arith.truncf %7 : vector<16x32xf32> to vector<16x32xbf16>
    %c0_6 = arith.constant 0 : index
    %c0_7 = arith.constant 0 : index
    %9 = vector.load %arg4[%c0_6, %c0_7] : memref<32x64xbf16, #tpu.memory_space<vmem>>, vector<32x64xbf16>
    %cst_8 = arith.constant dense<0.000000e+00> : vector<16x64xf32>
    %10 = tpu.matmul %8, %9, %cst_8 {dimension_numbers = #tpu.dot_dimension_numbers<[1], [0], [0], [1], [0, 0, 1, 1], [], []>} : vector<16x32xbf16>, vector<32x64xbf16>, vector<16x64xf32> -> vector<16x64xf32>
    %c0_9 = arith.constant 0 : index
    %c0_10 = arith.constant 0 : index
    %11 = vector.load %arg5[%c0_9, %c0_10] : memref<1x64xf32, #tpu.memory_space<vmem>>, vector<1x64xf32>
    %12 = vector.broadcast %11 : vector<1x64xf32> to vector<16x64xf32>
    %13 = arith.addf %10, %12 : vector<16x64xf32>
    %14 = arith.negf %13 : vector<16x64xf32>
    %15 = math.exp %14 : vector<16x64xf32>
    %cst_11 = arith.constant 1.000000e+00 : f32
    %16 = vector.broadcast %cst_11 : f32 to vector<16x64xf32>
    %17 = arith.addf %16, %15 : vector<16x64xf32>
    %18 = arith.divf %16, %17 : vector<16x64xf32>
    %c0_12 = arith.constant 0 : index
    %c0_13 = arith.constant 0 : index
    %19 = vector.load %arg6[%c0_12, %c0_13] : memref<16x64xf32, #tpu.memory_space<vmem>>, vector<16x64xf32>
    tpu.vector_store %arg6[%c0_12, %c0_13], %18 {strides = array<i32>} : memref<16x64xf32, #tpu.memory_space<vmem>>, vector<16x64xf32>,
    return
  }
  func.func @transform_0(%arg0: i32) -> (i32, i32) {
    %c0_i32 = arith.constant 0 : i32
    %c0_i32_0 = arith.constant 0 : i32
    return %arg0, %c0_i32 : i32, i32
  }
  func.func @transform_1(%arg0: i32) -> (i32, i32) {
    %c0_i32 = arith.constant 0 : i32
    %c0_i32_0 = arith.constant 0 : i32
    %c0_i32_1 = arith.constant 0 : i32
    return %c0_i32, %c0_i32_0 : i32, i32
  }
  func.func @transform_2(%arg0: i32) -> (i32, i32) {
    %c0_i32 = arith.constant 0 : i32
    %c0_i32_0 = arith.constant 0 : i32
    %c0_i32_1 = arith.constant 0 : i32
    return %c0_i32, %c0_i32_0 : i32, i32
  }
  func.func @transform_3(%arg0: i32) -> (i32, i32) {
    %c0_i32 = arith.constant 0 : i32
    %c0_i32_0 = arith.constant 0 : i32
    %c0_i32_1 = arith.constant 0 : i32
    return %c0_i32, %c0_i32_0 : i32, i32
  }
  func.func @transform_4(%arg0: i32) -> (i32, i32) {
    %c0_i32 = arith.constant 0 : i32
    %c0_i32_0 = arith.constant 0 : i32
    %c0_i32_1 = arith.constant 0 : i32
    return %c0_i32, %c0_i32_0 : i32, i32
  }
  func.func @transform_5(%arg0: i32) -> (i32, i32) {
    %c0_i32 = arith.constant 0 : i32
    %c0_i32_0 = arith.constant 0 : i32
    return %arg0, %c0_i32 : i32, i32
  }
}

</mosaic_0001>

<bundles_post_ra>
// kernel: tpu_custom_call.1
= control target key start
LH: loop header
LB: loop body
LE: loop exit
PB: predicated region body
PF: predicated region fallthrough
CT: control target
= control target key end

     0   :  { %10 = vsyncpa [#allocation3], 0  ;;  %s766_s0 = inlined_call_operand.vmem [shape: bf16[32,16], index: 0, kind: input, shape index: {}]   ;;  %s767_s1 = inlined_call_operand.vmem [shape: bf16[16,32], index: 1, kind: input, shape index: {}]   ;;  %s768_s2 = inlined_call_operand.vmem [shape: f32[1,32], index: 2, kind: input, shape index: {}]   ;;  %s769_s3 = inlined_call_operand.vmem [shape: bf16[32,64], index: 3, kind: input, shape index: {}]   ;;  %s770_s4 = inlined_call_operand.vmem [shape: f32[1,64], index: 4, kind: input, shape index: {}]   ;;  %s771_s5 = inlined_call_operand.hbm [shape: f32[32,64], index: 5, kind: output, shape index: {}]  }
   0x1   :  { %12 = vsyncpa [#allocation3 + $0x1], 0  ;;  %s650_s18 = smov 0   ;;  %s652_s19 = smov 0  }
   0x2   :  { %s654_s20 = smov 0   ;;  %s656_s21 = smov 0  }
   0x3 LB: > { %s671_s22 = sadd.s32 4294967295, %s613_s21   ;;  %s456_s23 = sadd.s32 4294967294, %s613_s21   ;;  %s613_s21 = sphi %s656_s21, %s777_s21   ;;  %s609_s20 = sphi %s654_s20, %s776_s20   ;;  %s605_s19 = sphi %s652_s19, %s775_s19   ;;  %s601_s18 = sphi %s650_s18, %s774_s18  }
   0x4   : > { %s675_s24 = sadd.s32 1, %s613_s21   ;;  %s135_s25 = sadd.s32 1, %s609_s20 }
   0x5   : > { %s132_s26 = ssub.s32 %s613_s21, %s675_s24  ;;  %p145_p0 = scmp.ne.s32.totalorder %s609_s20, %s605_s19 }
   0x6   : > { %p133_p1 = scmp.eq.s32.totalorder %s132_s26, 0  ;;  %p146_p2 = scmp.eq.s32.totalorder %s671_s22, 1 }
   0x7   : > { %p151_p3 = scmp.ne.s32.totalorder %s605_s19, %s601_s18  ;;  %p152_p4 = scmp.eq.s32.totalorder %s456_s23, 1 }
   0x8   : > { %s686_s27 = scalar_select %p133_p1, %s609_s20, %s135_s25  }
   0x9   : > { %p688_p5 = por %p146_p2, %p145_p0  ;;  %p692_p6 = por %p152_p4, %p151_p3 }
   0xa   : > { %p459_p7 = scmp.ge.s32.totalorder %s613_s21, 1  ;;  %p191_p8 = scmp.lt.s32.totalorder %s613_s21, 3 }
   0xc   : > { %p192_p9 = pnand %p459_p7, %p191_p8 }
   0xd   : > { %s461_s7 = sshll.u32 (!%p192_p9), %s671_s22, 1  ;;  %s216_s26 = sand.u32 (!%p192_p9), 1, %s605_s19  }
   0xe   : > { %195 = sbr.rel (%p192_p9) target bundleno = 472 (0x1d8), region = 40  ;;  %p220_p10 = scmp.lt.s32.totalorder (!%p192_p9), %s461_s7, 3 }
   0xf   : > { %s460_s30 = sshll.u32 (!%p192_p9), %s216_s26, 4  ;;  %s478_s6 = sshll.u32 (!%p192_p9), %s671_s22, 8 }
  0x10   : > { %s726_s12 = scalar_lea.sflag (!%p192_p9), [#allocation3], %s216_s26  ;;  %s617_s22 = smov (!%p192_p9), [#allocation2]  }
  0x11   : > { %s557_s14 = sshll.u32 (!%p192_p9), %s617_s22, 4  ;;  %s558_s14 = int_to_ptr.vmem [resolvable:$false] %s557_s14 }
  0x12   : > { %s559_s15 = scalar_lea.vmem (!%p192_p9), %s558_s14, 512 }
  0x13   : > { %v541_v0 = vld [vmem:[%s767_s1] sm:$0xff]   ;;  %v615_v1 = vmov 0.0   ;;  %vm616_vm0 = vmmov 0   ;;  %s779_s7 = smov (!%p220_p10, %s461_s7), 3  ;;  %vm249_vm1 = vcmask 130048   ;;  %v543_v3 = vld [vmem:[%s769_s3 + $0x8] sm:$0xff]  }
  0x14   : > { %484 = vmatprep.subr.bf16.mxu0 %v615_v1  ;;  %490 = vmatprep.subr.bf16.mxu1 %v615_v1  ;;  %s462_s8 = sshll.u32 %s779_s7, 2  ;;  %v544_v4 = vld [vmem:[%s769_s3] sm:$0xff]   ;;  %vm320_vm2 = vcmask 261120   ;;  %vm377_vm3 = vcmask 523264   ;;  %s218_s7 = scalar_lea.vmem [#allocation2], %s460_s30 }
  0x15   : > { %485 = vmatpush3.bf16.msra.mxu0 %v541_v0  ;;  %486 = vmatprep.mubr.msk.bf16.mxu0 %vm616_vm0, %v615_v1  ;;  %s223_s11 = scalar_lea.vmem %s766_s0, %s462_s8  ;;  %v463_v5 = vld [vmem:[%s768_s2] ss:$0 sm:$0xff]  ;;  %s394_s8 = sshll.u32 %s218_s7, 4  ;;  %s724_s8 = int_to_ptr.vmem [resolvable:$true] %s394_s8 }
  0x16   : > { %494 = vmatprep.mubr.msk.bf16.mxu1 %vm616_vm0, %v615_v1  ;;  %v542_v2 = vld [vmem:[%s223_s11] sm:$0xff]   ;;  %491 = vmatpush3.bf16.msra.mxu1 %v543_v3  ;;  %s722_s11 = scalar_lea.hbm %s771_s5, %s478_s6  ;;  %s553_s13 = scalar_lea.vmem %s724_s8, 256 }
  0x17   : > { %492 = vmatprep.subr.bf16.mxu1 %v615_v1  ;;  %v467_v15 = vld [vmem:[%s770_s4] ss:$0 sm:$0xff]  ;;  %p554_p11 = scmp.ne.s32.totalorder %s724_s8, %s553_s13  ;;  %p560_p0 = scmp.lt.s32.totalorder %s724_s8, %s558_s14 }
  0x18   : > { %487 = vmatmul.mubr.msk.bf16.vlgmr.msra.gmra.mxu0 %vm249_vm1, %v542_v2  ;;  %p561_p1 = scmp.lt.s32.totalorder %s559_s15, %s553_s13 }
  0x19   : > { %p555_p12 = pnand %p554_p11, %p688_p5 }
  0x1a   : > { %493 = vmatpush3.bf16.msra.mxu1 %v544_v4  ;;  %p562_p2 = por %p561_p1, %p560_p0 }
  0x1b   : > { %p556_p13 = pneg %p555_p12 }
  0x1d   : > { %p563_p3 = pnand %p562_p2, %p556_p13 }
  0xd8   : > { %v287_v6 = vpop.f32.mrf.mxu0 }
  0xd9   : > { %v288_v8 = vadd.f32 %v463_v5, %v287_v6 }
  0xda   : > { %v488_v7 = vpop.f32.mrf.mxu0 }
  0xdb   : > { %v294_v12 = vmax.f32 %v288_v8, 0.0 }
  0xdc   : > { %v290_v9 = vpop.f32.mrf.mxu0 }
  0xdd   : > { %v291_v10 = vadd.f32 %v463_v5, %v290_v9 }
  0xde   : > { %v489_v11 = vpop.f32.mrf.mxu0 }
  0xdf   : > { %v295_v13 = vmax.f32 %v291_v10, 0.0 }
  0xe1   : > { %v296_v14 = vpack.c.bf16 %v295_v13, %v294_v12 }
  0xe3   : > { %495 = vmatmul.mubr.msk.bf16.vlgmr.msra.gmra.mxu1 %vm320_vm2, %v296_v14 }
 0x1a3   : > { %v358_v16 = vpop.f32.mrf.mxu1 }
 0x1a4   : > { %v359_v17 = vadd.f32 %v467_v15, %v358_v16 }
 0x1a5   : > { %v496_v18 = vpop.f32.mrf.mxu1 }
 0x1a6   : > { %v471_v19 = vmul.f32 -1.442695, %v359_v17 }
 0x1a7   : > { %v361_v20 = vpop.f32.mrf.mxu1 }
 0x1a8   : > { %545 = vpow2.f32 %v471_v19  ;;  %v362_v21 = vadd.f32 %v467_v15, %v361_v20 }
 0x1a9   : > { %v497_v22 = vpop.f32.mrf.mxu1 }
 0x1aa   : > { %v472_v23 = vmul.f32 -1.442695, %v362_v21 }
 0x1ac   : > { %547 = vpow2.f32 %v472_v23 }
 0x1b5   : > { %v546_v24 = vpop.eup %545 }
 0x1b6   : > { %v371_v25 = vadd.f32 1.0, %v546_v24 }
 0x1b8   : > { %549 = vrcp.f32 %v371_v25 }
 0x1b9   : > { %v548_v26 = vpop.eup %547 }
 0x1ba   : > { %v372_v27 = vadd.f32 1.0, %v548_v26 }
 0x1bc   : > { %551 = vrcp.f32 %v372_v27 }
 0x1c5   : > { %v550_v28 = vpop.eup %549 }
 0x1c6   : > { %378 = vst.msk [vmem:[%s218_s7] sm:$0xff] %vm377_vm3, %v550_v28 }
 0x1c9   : > { %v552_v29 = vpop.eup %551 }
 0x1ca   : > { %379 = vst.msk [vmem:[%s218_s7 + $0x8] sm:$0xff] %vm377_vm3, %v552_v29 }
 0x1cb   : > { %566 = shalt.err (!%p563_p3)
}
 0x1cc   : > { %s567_s16 = scalar_lea.hbm %s722_s11, 256  ;;  %s571_s25 = scalar_lea.hbm %s771_s5, 512 }
 0x1cd   : > { %p568_p4 = scmp.ne.s32.totalorder %s722_s11, %s567_s16  ;;  %p572_p9 = scmp.lt.s32.totalorder %s722_s11, %s771_s5 }
 0x1ce   : > { %p573_p10 = scmp.lt.s32.totalorder %s571_s25, %s567_s16 }
 0x1cf   : > { %p569_p7 = pnand %p568_p4, %p688_p5 }
 0x1d0   : > { %p574_p11 = por %p573_p10, %p572_p9 }
 0x1d1   : > { %p570_p8 = pneg %p569_p7 }
 0x1d3   : > { %p575_p12 = pnand %p574_p11, %p570_p8 }
 0x1d5   : > { %578 = shalt.err (!%p575_p12)
}
 0x1d6   : > { %s618_s6 = smov 128   ;;  %s619_s7 = smov 8  }
 0x1d7   : > { %498 = dma.vmem_to_hbm [thread:$0]  (%p688_p5), %s724_s8, 256, %s722_s11, %s726_s12, %s618_s6, %s618_s6, %s619_s7  }
 0x1d8 PF: > { %p504_p13 = scmp.ge.s32.totalorder %s613_s21, 2  ;;  %s409_s9 = sand.u32 1, %s601_s18  }
 0x1d9   : > { %s410_s10 = scalar_lea.sflag [#allocation3], %s409_s9 }
 0x1da   : > { %p501_p0 = pnand %p504_p13, %p692_p6 }
 0x1dc   : > { %p502_p1 = pneg %p501_p0 }
 0x1de   : > { %596 = dma.done.wait (%p502_p1), %s410_s10, 256  }
 0x1df   : > { %598 = vsyncadd (%p502_p1), %s410_s10, 4294967040  ;;  %p15_p2 = scmp.ge.s32.totalorder %s675_s24, 4   ;;  %s774_s18 = smov %s605_s19 }
 0x1e0   : > { %s775_s19 = smov %s609_s20  ;;  %s776_s20 = smov %s686_s27 }
 0x1e1   : > { %s777_s21 = smov %s675_s24  ;;  %17 = sbr.rel (!%p15_p2) target bundleno = 3 (0x3), region = 75 }
 0x1e6   :  { %415 = vsyncpa [#allocation3], 1 }
 0x1e7   :  { %417 = vsyncpa [#allocation3 + $0x1], 1 }

// kernel: tpu_custom_call.1
= control target key start
LH: loop header
LB: loop body
LE: loop exit
PB: predicated region body
PF: predicated region fallthrough
CT: control target
= control target key end

     0   :  { %10 = vsyncpa [#allocation3], 0  ;;  %s766_s0 = inlined_call_operand.vmem [shape: bf16[32,16], index: 0, kind: input, shape index: {}]   ;;  %s767_s1 = inlined_call_operand.vmem [shape: bf16[16,32], index: 1, kind: input, shape index: {}]   ;;  %s768_s2 = inlined_call_operand.vmem [shape: f32[1,32], index: 2, kind: input, shape index: {}]   ;;  %s769_s3 = inlined_call_operand.vmem [shape: bf16[32,64], index: 3, kind: input, shape index: {}]   ;;  %s770_s4 = inlined_call_operand.vmem [shape: f32[1,64], index: 4, kind: input, shape index: {}]   ;;  %s771_s5 = inlined_call_operand.hbm [shape: f32[32,64], index: 5, kind: output, shape index: {}]  }
   0x1   :  { %12 = vsyncpa [#allocation3 + $0x1], 0  ;;  %s650_s18 = smov 0   ;;  %s652_s19 = smov 0  }
   0x2   :  { %s654_s20 = smov 0   ;;  %s656_s21 = smov 0  }
   0x3 LB: > { %s671_s22 = sadd.s32 4294967295, %s613_s21   ;;  %s456_s23 = sadd.s32 4294967294, %s613_s21   ;;  %s613_s21 = sphi %s656_s21, %s777_s21   ;;  %s609_s20 = sphi %s654_s20, %s776_s20   ;;  %s605_s19 = sphi %s652_s19, %s775_s19   ;;  %s601_s18 = sphi %s650_s18, %s774_s18  }
   0x4   : > { %s675_s24 = sadd.s32 1, %s613_s21   ;;  %s135_s25 = sadd.s32 1, %s609_s20 }
   0x5   : > { %s132_s26 = ssub.s32 %s613_s21, %s675_s24  ;;  %p145_p0 = scmp.ne.s32.totalorder %s609_s20, %s605_s19 }
   0x6   : > { %p133_p1 = scmp.eq.s32.totalorder %s132_s26, 0  ;;  %p146_p2 = scmp.eq.s32.totalorder %s671_s22, 1 }
   0x7   : > { %p151_p3 = scmp.ne.s32.totalorder %s605_s19, %s601_s18  ;;  %p152_p4 = scmp.eq.s32.totalorder %s456_s23, 1 }
   0x8   : > { %s686_s27 = scalar_select %p133_p1, %s609_s20, %s135_s25  }
   0x9   : > { %p688_p5 = por %p146_p2, %p145_p0  ;;  %p692_p6 = por %p152_p4, %p151_p3 }
   0xa   : > { %p459_p7 = scmp.ge.s32.totalorder %s613_s21, 1  ;;  %p191_p8 = scmp.lt.s32.totalorder %s613_s21, 3 }
   0xc   : > { %p192_p9 = pnand %p459_p7, %p191_p8 }
   0xd   : > { %s461_s7 = sshll.u32 (!%p192_p9), %s671_s22, 1  ;;  %s216_s26 = sand.u32 (!%p192_p9), 1, %s605_s19  }
   0xe   : > { %195 = sbr.rel (%p192_p9) target bundleno = 472 (0x1d8), region = 40  ;;  %p220_p10 = scmp.lt.s32.totalorder (!%p192_p9), %s461_s7, 3 }
   0xf   : > { %s460_s30 = sshll.u32 (!%p192_p9), %s216_s26, 4  ;;  %s478_s6 = sshll.u32 (!%p192_p9), %s671_s22, 8 }
  0x10   : > { %s726_s12 = scalar_lea.sflag (!%p192_p9), [#allocation3], %s216_s26  ;;  %s617_s22 = smov (!%p192_p9), [#allocation2]  }
  0x11   : > { %s557_s14 = sshll.u32 (!%p192_p9), %s617_s22, 4  ;;  %s558_s14 = int_to_ptr.vmem [resolvable:$false] %s557_s14 }
  0x12   : > { %s559_s15 = scalar_lea.vmem (!%p192_p9), %s558_s14, 512 }
  0x13   : > { %v541_v0 = vld [vmem:[%s767_s1] sm:$0xff]   ;;  %v615_v1 = vmov 0.0   ;;  %vm616_vm0 = vmmov 0   ;;  %s779_s7 = smov (!%p220_p10, %s461_s7), 3  ;;  %vm249_vm1 = vcmask 130048   ;;  %v543_v3 = vld [vmem:[%s769_s3 + $0x8] sm:$0xff]  }
  0x14   : > { %484 = vmatprep.subr.bf16.mxu0 %v615_v1  ;;  %490 = vmatprep.subr.bf16.mxu1 %v615_v1  ;;  %s462_s8 = sshll.u32 %s779_s7, 2  ;;  %v544_v4 = vld [vmem:[%s769_s3] sm:$0xff]   ;;  %vm320_vm2 = vcmask 261120   ;;  %vm377_vm3 = vcmask 523264   ;;  %s218_s7 = scalar_lea.vmem [#allocation2], %s460_s30 }
  0x15   : > { %485 = vmatpush3.bf16.msra.mxu0 %v541_v0  ;;  %486 = vmatprep.mubr.msk.bf16.mxu0 %vm616_vm0, %v615_v1  ;;  %s223_s11 = scalar_lea.vmem %s766_s0, %s462_s8  ;;  %v463_v5 = vld [vmem:[%s768_s2] ss:$0 sm:$0xff]  ;;  %s394_s8 = sshll.u32 %s218_s7, 4  ;;  %s724_s8 = int_to_ptr.vmem [resolvable:$true] %s394_s8 }
  0x16   : > { %494 = vmatprep.mubr.msk.bf16.mxu1 %vm616_vm0, %v615_v1  ;;  %v542_v2 = vld [vmem:[%s223_s11] sm:$0xff]   ;;  %491 = vmatpush3.bf16.msra.mxu1 %v543_v3  ;;  %s722_s11 = scalar_lea.hbm %s771_s5, %s478_s6  ;;  %s553_s13 = scalar_lea.vmem %s724_s8, 256 }
  0x17   : > { %492 = vmatprep.subr.bf16.mxu1 %v615_v1  ;;  %v467_v15 = vld [vmem:[%s770_s4] ss:$0 sm:$0xff]  ;;  %p554_p11 = scmp.ne.s32.totalorder %s724_s8, %s553_s13  ;;  %p560_p0 = scmp.lt.s32.totalorder %s724_s8, %s558_s14 }
  0x18   : > { %487 = vmatmul.mubr.msk.bf16.vlgmr.msra.gmra.mxu0 %vm249_vm1, %v542_v2  ;;  %p561_p1 = scmp.lt.s32.totalorder %s559_s15, %s553_s13 }
  0x19   : > { %p555_p12 = pnand %p554_p11, %p688_p5 }
  0x1a   : > { %493 = vmatpush3.bf16.msra.mxu1 %v544_v4  ;;  %p562_p2 = por %p561_p1, %p560_p0 }
  0x1b   : > { %p556_p13 = pneg %p555_p12 }
  0x1d   : > { %p563_p3 = pnand %p562_p2, %p556_p13 }
  0xd8   : > { %v287_v6 = vpop.f32.mrf.mxu0 }
  0xd9   : > { %v288_v8 = vadd.f32 %v463_v5, %v287_v6 }
  0xda   : > { %v488_v7 = vpop.f32.mrf.mxu0 }
  0xdb   : > { %v294_v12 = vmax.f32 %v288_v8, 0.0 }
  0xdc   : > { %v290_v9 = vpop.f32.mrf.mxu0 }
  0xdd   : > { %v291_v10 = vadd.f32 %v463_v5, %v290_v9 }
  0xde   : > { %v489_v11 = vpop.f32.mrf.mxu0 }
  0xdf   : > { %v295_v13 = vmax.f32 %v291_v10, 0.0 }
  0xe1   : > { %v296_v14 = vpack.c.bf16 %v295_v13, %v294_v12 }
  0xe3   : > { %495 = vmatmul.mubr.msk.bf16.vlgmr.msra.gmra.mxu1 %vm320_vm2, %v296_v14 }
 0x1a3   : > { %v358_v16 = vpop.f32.mrf.mxu1 }
 0x1a4   : > { %v359_v17 = vadd.f32 %v467_v15, %v358_v16 }
 0x1a5   : > { %v496_v18 = vpop.f32.mrf.mxu1 }
 0x1a6   : > { %v471_v19 = vmul.f32 -1.442695, %v359_v17 }
 0x1a7   : > { %v361_v20 = vpop.f32.mrf.mxu1 }
 0x1a8   : > { %545 = vpow2.f32 %v471_v19  ;;  %v362_v21 = vadd.f32 %v467_v15, %v361_v20 }
 0x1a9   : > { %v497_v22 = vpop.f32.mrf.mxu1 }
 0x1aa   : > { %v472_v23 = vmul.f32 -1.442695, %v362_v21 }
 0x1ac   : > { %547 = vpow2.f32 %v472_v23 }
 0x1b5   : > { %v546_v24 = vpop.eup %545 }
 0x1b6   : > { %v371_v25 = vadd.f32 1.0, %v546_v24 }
 0x1b8   : > { %549 = vrcp.f32 %v371_v25 }
 0x1b9   : > { %v548_v26 = vpop.eup %547 }
 0x1ba   : > { %v372_v27 = vadd.f32 1.0, %v548_v26 }
 0x1bc   : > { %551 = vrcp.f32 %v372_v27 }
 0x1c5   : > { %v550_v28 = vpop.eup %549 }
 0x1c6   : > { %378 = vst.msk [vmem:[%s218_s7] sm:$0xff] %vm377_vm3, %v550_v28 }
 0x1c9   : > { %v552_v29 = vpop.eup %551 }
 0x1ca   : > { %379 = vst.msk [vmem:[%s218_s7 + $0x8] sm:$0xff] %vm377_vm3, %v552_v29 }
 0x1cb   : > { %566 = shalt.err (!%p563_p3)
}
 0x1cc   : > { %s567_s16 = scalar_lea.hbm %s722_s11, 256  ;;  %s571_s25 = scalar_lea.hbm %s771_s5, 512 }
 0x1cd   : > { %p568_p4 = scmp.ne.s32.totalorder %s722_s11, %s567_s16  ;;  %p572_p9 = scmp.lt.s32.totalorder %s722_s11, %s771_s5 }
 0x1ce   : > { %p573_p10 = scmp.lt.s32.totalorder %s571_s25, %s567_s16 }
 0x1cf   : > { %p569_p7 = pnand %p568_p4, %p688_p5 }
 0x1d0   : > { %p574_p11 = por %p573_p10, %p572_p9 }
 0x1d1   : > { %p570_p8 = pneg %p569_p7 }
 0x1d3   : > { %p575_p12 = pnand %p574_p11, %p570_p8 }
 0x1d5   : > { %578 = shalt.err (!%p575_p12)
}
 0x1d6   : > { %s618_s6 = smov 128   ;;  %s619_s7 = smov 8  }
 0x1d7   : > { %498 = dma.vmem_to_hbm [thread:$0]  (%p688_p5), %s724_s8, 256, %s722_s11, %s726_s12, %s618_s6, %s618_s6, %s619_s7  }
 0x1d8 PF: > { %p504_p13 = scmp.ge.s32.totalorder %s613_s21, 2  ;;  %s409_s9 = sand.u32 1, %s601_s18  }
 0x1d9   : > { %s410_s10 = scalar_lea.sflag [#allocation3], %s409_s9 }
 0x1da   : > { %p501_p0 = pnand %p504_p13, %p692_p6 }
 0x1dc   : > { %p502_p1 = pneg %p501_p0 }
 0x1de   : > { %596 = dma.done.wait (%p502_p1), %s410_s10, 256  }
 0x1df   : > { %598 = vsyncadd (%p502_p1), %s410_s10, 4294967040  ;;  %p15_p2 = scmp.ge.s32.totalorder %s675_s24, 4   ;;  %s774_s18 = smov %s605_s19 }
 0x1e0   : > { %s775_s19 = smov %s609_s20  ;;  %s776_s20 = smov %s686_s27 }
 0x1e1   : > { %s777_s21 = smov %s675_s24  ;;  %17 = sbr.rel (!%p15_p2) target bundleno = 3 (0x3), region = 75 }
 0x1e6   :  { %415 = vsyncpa [#allocation3], 1 }
 0x1e7   :  { %417 = vsyncpa [#allocation3 + $0x1], 1 }

</bundles_post_ra>
